<compile_context>
chip_gen: v7x
topology: tpu7x:2x2x1
jax: 0.10.0
libtpu: 0.0.40
codegen_flags: <defaults>
</compile_context>

<pallas_src>
import functools

import jax
import jax.numpy as jnp
from jax import lax
from jax.experimental import pallas as pl
from jax.experimental.pallas import tpu as pltpu


def _attention_kernel(x_ref, wq_ref, wk_ref, wv_ref, wo_ref, o_ref, *,
                      heads, dim_head, block_b, seq_len):
    H, D, N, BT = heads, dim_head, seq_len, block_b
    M = BT * N
    f32 = jnp.float32

    # ---- QKV projection, batched over heads --------------------------------
    # x block (BT, N, dim) -> (M, dim); broadcast over heads so every matmul
    # below is a single head-batched dot_general (no per-head loop/lane slices).
    x = x_ref[...].reshape(M, -1).astype(jnp.bfloat16)            # (M, dim)
    xh = jnp.broadcast_to(x, (H,) + x.shape)                      # (H, M, dim)

    dn_proj = (((2,), (1,)), ((0,), (0,)))                        # contract dim, batch heads
    # Note: the 1/sqrt(D) scale is pre-folded into wq on the host side.
    q = lax.dot_general(xh, wq_ref[...], dn_proj, preferred_element_type=f32)  # (H, M, D)
    k = lax.dot_general(xh, wk_ref[...], dn_proj, preferred_element_type=f32)  # (H, M, D)
    v = lax.dot_general(xh, wv_ref[...], dn_proj, preferred_element_type=f32)  # (H, M, D)

    # (H, BT*N, D) -> (H*BT, N, D): split of the sublane axis only (layout
    # safe since N is a multiple of 8), then cast to bf16 for the MXU.
    qb = q.reshape(H * BT, N, D).astype(jnp.bfloat16)
    kb = k.reshape(H * BT, N, D).astype(jnp.bfloat16)
    vb = v.reshape(H * BT, N, D).astype(jnp.bfloat16)

    # ---- Scaled dot-product attention, batched over (head, batch-row) ------
    # K^T is absorbed into the contraction (no explicit transpose).
    dn_qk = (((2,), (2,)), ((0,), (0,)))
    scores = lax.dot_general(qb, kb, dn_qk, preferred_element_type=f32)  # (H*BT, N, N)

    # Numerically-stable softmax in f32.  Normalization is deferred to after
    # the PV matmul: exp() goes straight to the MXU, and the EUP approximate
    # reciprocal is applied to the (N, D) context instead of (N, N) scores.
    scores = scores - jnp.max(scores, axis=-1, keepdims=True)
    e = jnp.exp(scores)                                           # (H*BT, N, N) f32, <= 1
    l = jnp.sum(e, axis=-1, keepdims=True)                        # (H*BT, N, 1) f32

    dn_pv = (((2,), (1,)), ((0,), (0,)))
    ctx = lax.dot_general(e.astype(jnp.bfloat16), vb, dn_pv,
                          preferred_element_type=f32)             # (H*BT, N, D)
    ctx = ctx * pl.reciprocal(l, approx=True)                     # deferred softmax divide

    # ---- Output projection: head concat folded into a head-batched matmul --
    # (H*BT, N, D) -> (H, BT*N, D); project each head against its (D, dim)
    # slice of w_out and sum over heads (== concat-then-Linear of the module).
    ctx_h = ctx.reshape(H, M, D).astype(jnp.bfloat16)
    dn_out = (((2,), (1,)), ((0,), (0,)))
    y = lax.dot_general(ctx_h, wo_ref[...], dn_out,
                        preferred_element_type=f32)               # (H, M, dim)
    y = jnp.sum(y, axis=0)                                        # (M, dim)

    # Dropout p=0.0 -> identity at inference.
    o_ref[...] = y.reshape(BT, N, -1).astype(o_ref.dtype)


def attention_forward(x, w_qkv, w_out, *, heads, dim_head, block_b=None):
    b, n, dim = x.shape
    inner = heads * dim_head
    assert w_qkv.shape == (dim, 3 * inner)
    assert w_out.shape == (inner, dim)

    if block_b is None:
        block_b = next(c for c in (8, 4, 2, 1) if b % c == 0)
    assert b % block_b == 0, "batch must be divisible by block_b"

    # Wrapper-side layout plumbing: head-major bf16 weights so the kernel's
    # matmuls are head-batched dot_generals with no in-kernel weight slicing.
    # The softmax scale is folded into w_q in f32 before the bf16 cast.
    scale = dim_head ** (-0.5)

    def split_w(i, pre_scale=1.0):
        w = w_qkv[:, i * inner:(i + 1) * inner] * pre_scale       # (dim, inner) f32
        return w.reshape(dim, heads, dim_head).transpose(1, 0, 2).astype(jnp.bfloat16)

    wq = split_w(0, pre_scale=scale)                              # (H, dim, D), scale folded
    wk = split_w(1)
    wv = split_w(2)
    wo = w_out.reshape(heads, dim_head, dim).astype(jnp.bfloat16)  # (H, D, dim)

    kernel = functools.partial(_attention_kernel, heads=heads, dim_head=dim_head,
                               block_b=block_b, seq_len=n)

    grid = (b // block_b,)
    return pl.pallas_call(
        kernel,
        out_shape=jax.ShapeDtypeStruct((b, n, dim), x.dtype),
        grid=grid,
        in_specs=[
            pl.BlockSpec((block_b, n, dim), lambda i: (i, 0, 0)),       # x: block_b rows/step
            pl.BlockSpec((heads, dim, dim_head), lambda i: (0, 0, 0)),  # w_q (resident, pre-scaled)
            pl.BlockSpec((heads, dim, dim_head), lambda i: (0, 0, 0)),  # w_k (resident)
            pl.BlockSpec((heads, dim, dim_head), lambda i: (0, 0, 0)),  # w_v (resident)
            pl.BlockSpec((heads, dim_head, dim), lambda i: (0, 0, 0)),  # w_out (resident)
        ],
        out_specs=pl.BlockSpec((block_b, n, dim), lambda i: (i, 0, 0)),
        compiler_params=pltpu.CompilerParams(
            dimension_semantics=("parallel",)),
    )(x, wq, wk, wv, wo)


def attention_reference(x, w_qkv, w_out, *, heads, dim_head):
    """Pure-JAX f32 reference matching the PyTorch forward."""
    b, n, dim = x.shape
    inner = heads * dim_head
    scale = dim_head ** (-0.5)
    qkv = x @ w_qkv                                               # (b, n, 3*inner)
    q, k, v = jnp.split(qkv, 3, axis=-1)

    def to_heads(t):  # 'b n (h d) -> b h n d'
        return t.reshape(b, n, heads, dim_head).transpose(0, 2, 1, 3)

    q, k, v = map(to_heads, (q, k, v))
    dots = jnp.einsum('bhid,bhjd->bhij', q, k) * scale
    attn = jax.nn.softmax(dots, axis=-1)
    out = jnp.einsum('bhij,bhjd->bhid', attn, v)
    out = out.transpose(0, 2, 1, 3).reshape(b, n, inner)          # 'b h n d -> b n (h d)'
    return out @ w_out


if __name__ == "__main__":
    # Small shapes consistent with the module: x is (b, n, dim); dim=128 keeps
    # the output store lane-dense, heads=2/dim_head=64 mirror the module style.
    B, N, DIM = 4, 8, 128
    HEADS, DIM_HEAD = 2, 64
    INNER = HEADS * DIM_HEAD

    key = jax.random.PRNGKey(0)
    kx, kq, ko = jax.random.split(key, 3)
    x = jax.random.normal(kx, (B, N, DIM), dtype=jnp.float32)
    # Deterministic synthetic weights (stored as (in, out); torch Linear is (out, in)).
    w_qkv = jax.random.normal(kq, (DIM, 3 * INNER), dtype=jnp.float32) * 0.05
    w_out = jax.random.normal(ko, (INNER, DIM), dtype=jnp.float32) * 0.05

    out = attention_forward(x, w_qkv, w_out, heads=HEADS, dim_head=DIM_HEAD, block_b=2)
    out = jax.block_until_ready(out)

    ref = attention_reference(x, w_qkv, w_out, heads=HEADS, dim_head=DIM_HEAD)
    assert out.shape == (B, N, DIM)
    max_err = float(jnp.max(jnp.abs(out - ref)))
    # bf16 MXU operands + approx reciprocal vs. pure-f32 reference.
    assert jnp.allclose(out, ref, atol=2e-2, rtol=2e-2), f"mismatch vs reference (max abs err {max_err})"

    print("KERNEL_OK")
</pallas_src>

<mosaic_0001>
module attributes {stable_mosaic.version = 11 : i64} {
  func.func @_attention_kernel(%arg0: i32, %arg1: memref<2x8x128xf32, #tpu.memory_space<vmem>>, %arg2: memref<2x128x64xbf16, #tpu.memory_space<vmem>>, %arg3: memref<2x128x64xbf16, #tpu.memory_space<vmem>>, %arg4: memref<2x128x64xbf16, #tpu.memory_space<vmem>>, %arg5: memref<2x64x128xbf16, #tpu.memory_space<vmem>>, %arg6: memref<2x8x128xf32, #tpu.memory_space<vmem>>) attributes {dimension_semantics = [#tpu.dimension_semantics<parallel>], iteration_bounds = array<i64: 2>, scalar_prefetch = 0 : i64, scratch_operands = 0 : i64, tpu.core_type = #tpu.core_type<tc>, window_params = [{transform_indices = @transform_0, window_bounds = array<i64: 2, 8, 128>}, {pipeline_mode = #tpu.pipeline_mode<synchronous>, transform_indices = @transform_1, window_bounds = array<i64: 2, 128, 64>}, {pipeline_mode = #tpu.pipeline_mode<synchronous>, transform_indices = @transform_2, window_bounds = array<i64: 2, 128, 64>}, {pipeline_mode = #tpu.pipeline_mode<synchronous>, transform_indices = @transform_3, window_bounds = array<i64: 2, 128, 64>}, {pipeline_mode = #tpu.pipeline_mode<synchronous>, transform_indices = @transform_4, window_bounds = array<i64: 2, 64, 128>}, {transform_indices = @transform_5, window_bounds = array<i64: 2, 8, 128>}]} {
    %c0 = arith.constant 0 : index
    %c0_0 = arith.constant 0 : index
    %c0_1 = arith.constant 0 : index
    %0 = vector.load %arg1[%c0, %c0_0, %c0_1] : memref<2x8x128xf32, #tpu.memory_space<vmem>>, vector<2x8x128xf32>
    %1 = vector.shape_cast %0 : vector<2x8x128xf32> to vector<16x128xf32>
    %2 = arith.truncf %1 : vector<16x128xf32> to vector<16x128xbf16>
    %3 = vector.shape_cast %2 : vector<16x128xbf16> to vector<1x16x128xbf16>
    %4 = vector.broadcast %3 : vector<1x16x128xbf16> to vector<2x16x128xbf16>
    %c0_2 = arith.constant 0 : index
    %c0_3 = arith.constant 0 : index
    %c0_4 = arith.constant 0 : index
    %5 = vector.load %arg2[%c0_2, %c0_3, %c0_4] : memref<2x128x64xbf16, #tpu.memory_space<vmem>>, vector<2x128x64xbf16>
    %cst = arith.constant dense<0.000000e+00> : vector<2x16x64xf32>
    %6 = tpu.matmul %4, %5, %cst {dimension_numbers = #tpu.dot_dimension_numbers<[2], [1], [1], [2], [0, 0, 0, 1, 1, 2], [0], [0]>} : vector<2x16x128xbf16>, vector<2x128x64xbf16>, vector<2x16x64xf32> -> vector<2x16x64xf32>
    %c0_5 = arith.constant 0 : index
    %c0_6 = arith.constant 0 : index
    %c0_7 = arith.constant 0 : index
    %7 = vector.load %arg3[%c0_5, %c0_6, %c0_7] : memref<2x128x64xbf16, #tpu.memory_space<vmem>>, vector<2x128x64xbf16>
    %cst_8 = arith.constant dense<0.000000e+00> : vector<2x16x64xf32>
    %8 = tpu.matmul %4, %7, %cst_8 {dimension_numbers = #tpu.dot_dimension_numbers<[2], [1], [1], [2], [0, 0, 0, 1, 1, 2], [0], [0]>} : vector<2x16x128xbf16>, vector<2x128x64xbf16>, vector<2x16x64xf32> -> vector<2x16x64xf32>
    %c0_9 = arith.constant 0 : index
    %c0_10 = arith.constant 0 : index
    %c0_11 = arith.constant 0 : index
    %9 = vector.load %arg4[%c0_9, %c0_10, %c0_11] : memref<2x128x64xbf16, #tpu.memory_space<vmem>>, vector<2x128x64xbf16>
    %cst_12 = arith.constant dense<0.000000e+00> : vector<2x16x64xf32>
    %10 = tpu.matmul %4, %9, %cst_12 {dimension_numbers = #tpu.dot_dimension_numbers<[2], [1], [1], [2], [0, 0, 0, 1, 1, 2], [0], [0]>} : vector<2x16x128xbf16>, vector<2x128x64xbf16>, vector<2x16x64xf32> -> vector<2x16x64xf32>
    %11 = vector.shape_cast %6 : vector<2x16x64xf32> to vector<4x8x64xf32>
    %12 = arith.truncf %11 : vector<4x8x64xf32> to vector<4x8x64xbf16>
    %13 = vector.shape_cast %8 : vector<2x16x64xf32> to vector<4x8x64xf32>
    %14 = arith.truncf %13 : vector<4x8x64xf32> to vector<4x8x64xbf16>
    %15 = vector.shape_cast %10 : vector<2x16x64xf32> to vector<4x8x64xf32>
    %16 = arith.truncf %15 : vector<4x8x64xf32> to vector<4x8x64xbf16>
    %cst_13 = arith.constant dense<0.000000e+00> : vector<4x8x8xf32>
    %17 = tpu.matmul %12, %14, %cst_13 {dimension_numbers = #tpu.dot_dimension_numbers<[2], [2], [1], [1], [0, 0, 0, 1, 1, 1], [0], [0]>} : vector<4x8x64xbf16>, vector<4x8x64xbf16>, vector<4x8x8xf32> -> vector<4x8x8xf32>
    %cst_14 = arith.constant dense<0xFF800000> : vector<4x8xf32>
    %18 = vector.multi_reduction <maximumf>, %17, %cst_14 [2] : vector<4x8x8xf32> to vector<4x8xf32>
    %19 = vector.shape_cast %18 : vector<4x8xf32> to vector<4x8x1xf32>
    %20 = vector.broadcast %19 : vector<4x8x1xf32> to vector<4x8x8xf32>
    %21 = arith.subf %17, %20 : vector<4x8x8xf32>
    %22 = math.exp %21 : vector<4x8x8xf32>
    %cst_15 = arith.constant dense<0.000000e+00> : vector<4x8xf32>
    %23 = vector.multi_reduction <add>, %22, %cst_15 [2] : vector<4x8x8xf32> to vector<4x8xf32>
    %24 = vector.shape_cast %23 : vector<4x8xf32> to vector<4x8x1xf32>
    %25 = arith.truncf %22 : vector<4x8x8xf32> to vector<4x8x8xbf16>
    %cst_16 = arith.constant dense<0.000000e+00> : vector<4x8x64xf32>
    %26 = tpu.matmul %25, %16, %cst_16 {dimension_numbers = #tpu.dot_dimension_numbers<[2], [1], [1], [2], [0, 0, 0, 1, 1, 2], [0], [0]>} : vector<4x8x8xbf16>, vector<4x8x64xbf16>, vector<4x8x64xf32> -> vector<4x8x64xf32>
    %27 = tpu.reciprocal %24 {approx = true} : vector<4x8x1xf32> -> vector<4x8x1xf32>
    %28 = vector.broadcast %27 : vector<4x8x1xf32> to vector<4x8x64xf32>
    %29 = arith.mulf %26, %28 : vector<4x8x64xf32>
    %30 = vector.shape_cast %29 : vector<4x8x64xf32> to vector<2x16x64xf32>
    %31 = arith.truncf %30 : vector<2x16x64xf32> to vector<2x16x64xbf16>
    %c0_17 = arith.constant 0 : index
    %c0_18 = arith.constant 0 : index
    %c0_19 = arith.constant 0 : index
    %32 = vector.load %arg5[%c0_17, %c0_18, %c0_19] : memref<2x64x128xbf16, #tpu.memory_space<vmem>>, vector<2x64x128xbf16>
    %cst_20 = arith.constant dense<0.000000e+00> : vector<2x16x128xf32>
    %33 = tpu.matmul %31, %32, %cst_20 {dimension_numbers = #tpu.dot_dimension_numbers<[2], [1], [1], [2], [0, 0, 0, 1, 1, 2], [0], [0]>} : vector<2x16x64xbf16>, vector<2x64x128xbf16>, vector<2x16x128xf32> -> vector<2x16x128xf32>
    %cst_21 = arith.constant dense<0.000000e+00> : vector<16x128xf32>
    %34 = vector.multi_reduction <add>, %33, %cst_21 [0] : vector<2x16x128xf32> to vector<16x128xf32>
    %35 = vector.shape_cast %34 : vector<16x128xf32> to vector<2x8x128xf32>
    %c0_22 = arith.constant 0 : index
    %c0_23 = arith.constant 0 : index
    %c0_24 = arith.constant 0 : index
    %36 = vector.load %arg6[%c0_22, %c0_23, %c0_24] : memref<2x8x128xf32, #tpu.memory_space<vmem>>, vector<2x8x128xf32>
    tpu.vector_store %arg6[%c0_22, %c0_23, %c0_24], %35 {strides = array<i32>} : memref<2x8x128xf32, #tpu.memory_space<vmem>>, vector<2x8x128xf32>,
    return
  }
  func.func @transform_0(%arg0: i32) -> (i32, i32, i32) {
    %c0_i32 = arith.constant 0 : i32
    %c0_i32_0 = arith.constant 0 : i32
    %c0_i32_1 = arith.constant 0 : i32
    return %arg0, %c0_i32, %c0_i32_0 : i32, i32, i32
  }
  func.func @transform_1(%arg0: i32) -> (i32, i32, i32) {
    %c0_i32 = arith.constant 0 : i32
    %c0_i32_0 = arith.constant 0 : i32
    %c0_i32_1 = arith.constant 0 : i32
    %c0_i32_2 = arith.constant 0 : i32
    return %c0_i32, %c0_i32_0, %c0_i32_1 : i32, i32, i32
  }
  func.func @transform_2(%arg0: i32) -> (i32, i32, i32) {
    %c0_i32 = arith.constant 0 : i32
    %c0_i32_0 = arith.constant 0 : i32
    %c0_i32_1 = arith.constant 0 : i32
    %c0_i32_2 = arith.constant 0 : i32
    return %c0_i32, %c0_i32_0, %c0_i32_1 : i32, i32, i32
  }
  func.func @transform_3(%arg0: i32) -> (i32, i32, i32) {
    %c0_i32 = arith.constant 0 : i32
    %c0_i32_0 = arith.constant 0 : i32
    %c0_i32_1 = arith.constant 0 : i32
    %c0_i32_2 = arith.constant 0 : i32
    return %c0_i32, %c0_i32_0, %c0_i32_1 : i32, i32, i32
  }
  func.func @transform_4(%arg0: i32) -> (i32, i32, i32) {
    %c0_i32 = arith.constant 0 : i32
    %c0_i32_0 = arith.constant 0 : i32
    %c0_i32_1 = arith.constant 0 : i32
    %c0_i32_2 = arith.constant 0 : i32
    return %c0_i32, %c0_i32_0, %c0_i32_1 : i32, i32, i32
  }
  func.func @transform_5(%arg0: i32) -> (i32, i32, i32) {
    %c0_i32 = arith.constant 0 : i32
    %c0_i32_0 = arith.constant 0 : i32
    %c0_i32_1 = arith.constant 0 : i32
    return %arg0, %c0_i32, %c0_i32_0 : i32, i32, i32
  }
}

</mosaic_0001>

<bundles_post_ra>
// kernel: tpu_custom_call.1
= control target key start
LH: loop header
LB: loop body
LE: loop exit
PB: predicated region body
PF: predicated region fallthrough
CT: control target
= control target key end

     0   :  { %10 = vsyncpa [#allocation3], 0  ;;  %s2492_s0 = inlined_call_operand.vmem [shape: f32[4,8,128], index: 0, kind: input, shape index: {}]   ;;  %s2493_s1 = inlined_call_operand.vmem [shape: bf16[2,128,64], index: 1, kind: input, shape index: {}]   ;;  %s2494_s2 = inlined_call_operand.vmem [shape: bf16[2,128,64], index: 2, kind: input, shape index: {}]   ;;  %s2495_s3 = inlined_call_operand.vmem [shape: bf16[2,128,64], index: 3, kind: input, shape index: {}]   ;;  %s2496_s4 = inlined_call_operand.vmem [shape: bf16[2,64,128], index: 4, kind: input, shape index: {}]   ;;  %s2497_s5 = inlined_call_operand.hbm [shape: f32[4,8,128], index: 5, kind: output, shape index: {}]  }
   0x1   :  { %12 = vsyncpa [#allocation3 + $0x1], 0  ;;  %s2092_s18 = smov 0   ;;  %s2094_s19 = smov 0  }
   0x2   :  { %s2096_s20 = smov 0   ;;  %s2098_s21 = smov 0  }
   0x3 LB: > { %s2113_s22 = sadd.s32 4294967295, %s2055_s21   ;;  %s1525_s23 = sadd.s32 4294967294, %s2055_s21   ;;  %s2055_s21 = sphi %s2098_s21, %s2503_s21   ;;  %s2051_s20 = sphi %s2096_s20, %s2502_s20   ;;  %s2047_s19 = sphi %s2094_s19, %s2501_s19   ;;  %s2043_s18 = sphi %s2092_s18, %s2500_s18  }
   0x4   : > { %s2117_s24 = sadd.s32 1, %s2055_s21   ;;  %s135_s25 = sadd.s32 1, %s2051_s20 }
   0x5   : > { %s132_s26 = ssub.s32 %s2055_s21, %s2117_s24  ;;  %p145_p0 = scmp.ne.s32.totalorder %s2051_s20, %s2047_s19 }
   0x6   : > { %p133_p1 = scmp.eq.s32.totalorder %s132_s26, 0  ;;  %p146_p2 = scmp.eq.s32.totalorder %s2113_s22, 1 }
   0x7   : > { %p151_p3 = scmp.ne.s32.totalorder %s2047_s19, %s2043_s18  ;;  %p152_p4 = scmp.eq.s32.totalorder %s1525_s23, 1 }
   0x8   : > { %s2128_s27 = scalar_select %p133_p1, %s2051_s20, %s135_s25  }
   0x9   : > { %p2130_p5 = por %p146_p2, %p145_p0  ;;  %p2134_p6 = por %p152_p4, %p151_p3 }
   0xa   : > { %p1528_p7 = scmp.ge.s32.totalorder %s2055_s21, 1  ;;  %p191_p8 = scmp.lt.s32.totalorder %s2055_s21, 3 }
   0xc   : > { %p192_p9 = pnand %p1528_p7, %p191_p8 }
   0xd   : > { %v1921_v0 = vld [vmem:[%s2493_s1] sm:$0xff] (!%p192_p9)   ;;  %v2057_v1 = vmov (!%p192_p9), 0.0   ;;  %v1922_v2 = vld [vmem:[%s2493_s1 + $0x8] sm:$0xff] (!%p192_p9)   ;;  %vm2058_vm0 = vmmov (!%p192_p9), 0   ;;  %v1924_v5 = vld [vmem:[%s2493_s1 + $0x10] sm:$0xff] (!%p192_p9)   ;;  %s1530_s17 = sshll.u32 (!%p192_p9), %s2113_s22, 1 }
   0xe   : > { %195 = sbr.rel (%p192_p9) target bundleno = 1131 (0x46b), region = 40  ;;  %1684 = vmatprep.subr.bf16.mxu0 (!%p192_p9), %v2057_v1  ;;  %1704 = vmatprep.subr.bf16.mxu1 (!%p192_p9), %v2057_v1  ;;  %v1923_v3 = vld [vmem:[%s2493_s1 + $0x40] sm:$0xff] (!%p192_p9)   ;;  %v1925_v4 = vld [vmem:[%s2493_s1 + $0x48] sm:$0xff] (!%p192_p9)   ;;  %v1927_v6 = vld [vmem:[%s2493_s1 + $0x50] sm:$0xff] (!%p192_p9)   ;;  %p220_p10 = scmp.lt.s32.totalorder (!%p192_p9), %s1530_s17, 3  ;;  %vm872_vm1 = vcmask (!%p192_p9), 523264  }
   0xf   : > { %1685 = vmatpush3.bf16.msra.mxu0 (!%p192_p9), %v1921_v0  ;;  %1700 = vmatprep.mubr.msk.bf16.mxu0 (!%p192_p9), %vm2058_vm0, %v2057_v1  ;;  %v1926_v7 = vld [vmem:[%s2493_s1 + $0x18] sm:$0xff] (!%p192_p9)   ;;  %v1928_v9 = vld [vmem:[%s2493_s1 + $0x20] sm:$0xff] (!%p192_p9)   ;;  %v1930_v11 = vld [vmem:[%s2493_s1 + $0x28] sm:$0xff] (!%p192_p9)   ;;  %vm1101_vm2 = vcmask (!%p192_p9), 1043456   ;;  %vm1057_vm3 = vcmask (!%p192_p9), 64512   ;;  %s216_s10 = sand.u32 (!%p192_p9), 1, %s2047_s19  }
  0x10   : > { %1686 = vmatprep.subr.bf16.mxu0 (!%p192_p9), %v2057_v1  ;;  %1720 = vmatprep.mubr.msk.bf16.mxu1 (!%p192_p9), %vm2058_vm0, %v2057_v1  ;;  %v1929_v8 = vld [vmem:[%s2493_s1 + $0x58] sm:$0xff] (!%p192_p9)   ;;  %v1931_v10 = vld [vmem:[%s2493_s1 + $0x60] sm:$0xff] (!%p192_p9)   ;;  %v1933_v12 = vld [vmem:[%s2493_s1 + $0x68] sm:$0xff] (!%p192_p9)   ;;  %s1529_s11 = sshll.u32 (!%p192_p9), %s216_s10, 4  ;;  %s1603_s14 = sshll.u32 (!%p192_p9), %s2113_s22, 8 }
  0x11   : > { %1705 = vmatpush3.bf16.msra.mxu1 (!%p192_p9), %v1923_v3  ;;  %v1932_v13 = vld [vmem:[%s2493_s1 + $0x30] sm:$0xff] (!%p192_p9)   ;;  %v1934_v14 = vld [vmem:[%s2493_s1 + $0x38] sm:$0xff] (!%p192_p9)   ;;  %v1936_v20 = vld [vmem:[%s2494_s2] sm:$0xff] (!%p192_p9)   ;;  %s2449_s23 = scalar_lea.hbm (!%p192_p9), %s2497_s5, %s1603_s14  ;;  %s2451_s25 = scalar_lea.sflag (!%p192_p9), [#allocation3], %s216_s10 }
  0x12   : > { %1706 = vmatprep.subr.bf16.mxu1 (!%p192_p9), %v2057_v1  ;;  %v1935_v15 = vld [vmem:[%s2493_s1 + $0x70] sm:$0xff] (!%p192_p9)   ;;  %v1937_v18 = vld [vmem:[%s2493_s1 + $0x78] sm:$0xff] (!%p192_p9)   ;;  %v1939_v21 = vld [vmem:[%s2494_s2 + $0x40] sm:$0xff] (!%p192_p9)  }
  0x13   : > { %1687 = vmatpush3.bf16.msra.mxu0 (!%p192_p9), %v1922_v2  ;;  %v1938_v22 = vld [vmem:[%s2494_s2 + $0x8] sm:$0xff] (!%p192_p9)   ;;  %v1940_v24 = vld [vmem:[%s2494_s2 + $0x10] sm:$0xff] (!%p192_p9)   ;;  %v1942_v26 = vld [vmem:[%s2494_s2 + $0x18] sm:$0xff] (!%p192_p9)  }
  0x14   : > { %1688 = vmatprep.subr.bf16.mxu0 (!%p192_p9), %v2057_v1  ;;  %v1941_v23 = vld [vmem:[%s2494_s2 + $0x48] sm:$0xff] (!%p192_p9)   ;;  %v1943_v25 = vld [vmem:[%s2494_s2 + $0x50] sm:$0xff] (!%p192_p9)   ;;  %v1945_v27 = vld [vmem:[%s2494_s2 + $0x58] sm:$0xff] (!%p192_p9)  }
  0x15   : > { %1707 = vmatpush3.bf16.msra.mxu1 %v1925_v4  ;;  %s2505_s17 = smov (!%p220_p10, %s1530_s17), 3  ;;  %v1944_v28 = vld [vmem:[%s2494_s2 + $0x20] sm:$0xff]   ;;  %v1946_v30 = vld [vmem:[%s2494_s2 + $0x28] sm:$0xff]   ;;  %v1948_v32 = vld [vmem:[%s2494_s2 + $0x30] sm:$0xff]  }
  0x16   : > { %1708 = vmatprep.subr.bf16.mxu1 %v2057_v1  ;;  %s1531_s12 = sshll.u32 %s2505_s17, 3  ;;  %v1947_v29 = vld [vmem:[%s2494_s2 + $0x60] sm:$0xff]   ;;  %v1949_v31 = vld [vmem:[%s2494_s2 + $0x68] sm:$0xff]   ;;  %v1951_v33 = vld [vmem:[%s2494_s2 + $0x70] sm:$0xff]  }
  0x17   : > { %1689 = vmatpush3.bf16.msra.mxu0 %v1924_v5  ;;  %s223_s26 = scalar_lea.vmem %s2492_s0, %s1531_s12  ;;  %v1950_v34 = vld [vmem:[%s2494_s2 + $0x38] sm:$0xff]   ;;  %v1953_v36 = vld [vmem:[%s2495_s3] sm:$0xff]   ;;  %v1955_v38 = vld [vmem:[%s2495_s3 + $0x8] sm:$0xff]   ;;  %s218_s12 = scalar_lea.vmem [#allocation2], %s1529_s11 }
  0x18   : > { %1690 = vmatprep.subr.bf16.mxu0 %v2057_v1  ;;  %v227_v16 = vld [vmem:[%s223_s26] sm:$0xff]  ;;  %v228_v17 = vld [vmem:[%s223_s26 + $0x8] sm:$0xff]  ;;  %v1952_v35 = vld [vmem:[%s2494_s2 + $0x78] sm:$0xff]   ;;  %s1463_s13 = sshll.u32 %s218_s12, 4  ;;  %s2059_s26 = smov [#allocation2]   ;;  %s2444_s13 = int_to_ptr.vmem [resolvable:$true] %s1463_s13 }
  0x19   : > { %1709 = vmatpush3.bf16.msra.mxu1 %v1927_v6  ;;  %v2211_v19 = vpack.c.bf16 %v228_v17, %v227_v16  ;;  %v1954_v37 = vld [vmem:[%s2495_s3 + $0x40] sm:$0xff]   ;;  %v1956_v39 = vld [vmem:[%s2495_s3 + $0x48] sm:$0xff]   ;;  %v1957_v40 = vld [vmem:[%s2495_s3 + $0x10] sm:$0xff]   ;;  %s1993_s22 = scalar_lea.vmem %s2444_s13, 256  ;;  %s1997_s17 = sshll.u32 %s2059_s26, 4  ;;  %s1998_s17 = int_to_ptr.vmem [resolvable:$false] %s1997_s17 }
  0x1a   : > { %1710 = vmatprep.subr.bf16.mxu1 %v2057_v1  ;;  %v1958_v41 = vld [vmem:[%s2495_s3 + $0x50] sm:$0xff]   ;;  %v1959_v42 = vld [vmem:[%s2495_s3 + $0x18] sm:$0xff]   ;;  %v1961_v44 = vld [vmem:[%s2495_s3 + $0x20] sm:$0xff]   ;;  %p1994_p11 = scmp.ne.s32.totalorder %s2444_s13, %s1993_s22  ;;  %s1999_s30 = scalar_lea.vmem %s1998_s17, 512 }
  0x1b   : > { %1691 = vmatpush3.bf16.msra.mxu0 %v1926_v7  ;;  %v1960_v43 = vld [vmem:[%s2495_s3 + $0x58] sm:$0xff]   ;;  %v1962_v45 = vld [vmem:[%s2495_s3 + $0x60] sm:$0xff]   ;;  %v1963_v46 = vld [vmem:[%s2495_s3 + $0x28] sm:$0xff]   ;;  %p2000_p0 = scmp.lt.s32.totalorder %s2444_s13, %s1998_s17  ;;  %p2001_p1 = scmp.lt.s32.totalorder %s1999_s30, %s1993_s22 }
  0x1c   : > { %1692 = vmatprep.subr.bf16.mxu0 %v2057_v1  ;;  %v1964_v47 = vld [vmem:[%s2495_s3 + $0x68] sm:$0xff]   ;;  %v1965_v48 = vld [vmem:[%s2495_s3 + $0x30] sm:$0xff]   ;;  %v1967_v50 = vld [vmem:[%s2495_s3 + $0x38] sm:$0xff]   ;;  %p1995_p12 = pnand %p1994_p11, %p2130_p5 }
  0x1d   : > { %1711 = vmatpush3.bf16.msra.mxu1 %v1929_v8  ;;  %v1966_v49 = vld [vmem:[%s2495_s3 + $0x70] sm:$0xff]   ;;  %v1968_v51 = vld [vmem:[%s2495_s3 + $0x78] sm:$0xff]   ;;  %p2002_p2 = por %p2001_p1, %p2000_p0 }
  0x1e   : > { %1712 = vmatprep.subr.bf16.mxu1 %v2057_v1  ;;  %p1996_p13 = pneg %p1995_p12 }
  0x1f   : > { %1693 = vmatpush3.bf16.msra.mxu0 %v1928_v9 }
  0x20   : > { %1694 = vmatprep.subr.bf16.mxu0 %v2057_v1  ;;  %p2003_p3 = pnand %p2002_p2, %p1996_p13 }
  0x21   : > { %1713 = vmatpush3.bf16.msra.mxu1 %v1931_v10 }
  0x22   : > { %1714 = vmatprep.subr.bf16.mxu1 %v2057_v1 }
  0x23   : > { %1695 = vmatpush3.bf16.msra.mxu0 %v1930_v11 }
  0x24   : > { %1696 = vmatprep.subr.bf16.mxu0 %v2057_v1 }
  0x25   : > { %1715 = vmatpush3.bf16.msra.mxu1 %v1933_v12 }
  0x26   : > { %1716 = vmatprep.subr.bf16.mxu1 %v2057_v1 }
  0x27   : > { %1697 = vmatpush3.bf16.msra.mxu0 %v1932_v13 }
  0x28   : > { %1698 = vmatprep.subr.bf16.mxu0 %v2057_v1 }
  0x29   : > { %1717 = vmatpush3.bf16.msra.mxu1 %v1935_v15 }
  0x2a   : > { %1718 = vmatprep.subr.bf16.mxu1 %v2057_v1 }
  0x2b   : > { %1699 = vmatpush3.bf16.msra.mxu0 %v1934_v14 }
  0x2c   : > { %1724 = vmatprep.subr.bf16.mxu0 %v2057_v1 }
  0x2d   : > { %1719 = vmatpush3.bf16.msra.mxu1 %v1937_v18 }
  0x2e   : > { %1701 = vmatmul.mubr.bf16.vlgmr.msra.gmra.mrb[0].mxu0 %v2211_v19  ;;  %1744 = vmatprep.subr.bf16.mxu1 %v2057_v1 }
  0x2f   : > { %1725 = vmatpush3.bf16.msra.mxu0 %v1936_v20  ;;  %1740 = vmatprep.mubr.msk.bf16.mxu0 %vm2058_vm0, %v2057_v1 }
  0x30   : > { %1726 = vmatprep.subr.bf16.mxu0 %v2057_v1  ;;  %1721 = vmatmul.mubr.bf16.vlgmr.msra.gmra.mrb[0].mxu1 %v2211_v19 }
  0x31   : > { %1745 = vmatpush3.bf16.msra.mxu1 %v1939_v21  ;;  %1760 = vmatprep.mubr.msk.bf16.mxu1 %vm2058_vm0, %v2057_v1 }
  0x32   : > { %1746 = vmatprep.subr.bf16.mxu1 %v2057_v1 }
  0x33   : > { %1727 = vmatpush3.bf16.msra.mxu0 %v1938_v22 }
  0x34   : > { %1728 = vmatprep.subr.bf16.mxu0 %v2057_v1 }
  0x35   : > { %1747 = vmatpush3.bf16.msra.mxu1 %v1941_v23 }
  0x36   : > { %1748 = vmatprep.subr.bf16.mxu1 %v2057_v1 }
  0x37   : > { %1729 = vmatpush3.bf16.msra.mxu0 %v1940_v24 }
  0x38   : > { %1730 = vmatprep.subr.bf16.mxu0 %v2057_v1 }
  0x39   : > { %1749 = vmatpush3.bf16.msra.mxu1 %v1943_v25 }
  0x3a   : > { %1750 = vmatprep.subr.bf16.mxu1 %v2057_v1 }
  0x3b   : > { %1731 = vmatpush3.bf16.msra.mxu0 %v1942_v26 }
  0x3c   : > { %1732 = vmatprep.subr.bf16.mxu0 %v2057_v1 }
  0x3d   : > { %1751 = vmatpush3.bf16.msra.mxu1 %v1945_v27 }
  0x3e   : > { %1752 = vmatprep.subr.bf16.mxu1 %v2057_v1 }
  0x3f   : > { %1733 = vmatpush3.bf16.msra.mxu0 %v1944_v28 }
  0x40   : > { %1734 = vmatprep.subr.bf16.mxu0 %v2057_v1 }
  0x41   : > { %1753 = vmatpush3.bf16.msra.mxu1 %v1947_v29 }
  0x42   : > { %1754 = vmatprep.subr.bf16.mxu1 %v2057_v1 }
  0x43   : > { %1735 = vmatpush3.bf16.msra.mxu0 %v1946_v30 }
  0x44   : > { %1736 = vmatprep.subr.bf16.mxu0 %v2057_v1 }
  0x45   : > { %1755 = vmatpush3.bf16.msra.mxu1 %v1949_v31 }
  0x46   : > { %1756 = vmatprep.subr.bf16.mxu1 %v2057_v1 }
  0x47   : > { %1737 = vmatpush3.bf16.msra.mxu0 %v1948_v32 }
  0x48   : > { %1738 = vmatprep.subr.bf16.mxu0 %v2057_v1 }
  0x49   : > { %1757 = vmatpush3.bf16.msra.mxu1 %v1951_v33 }
  0x4a   : > { %1758 = vmatprep.subr.bf16.mxu1 %v2057_v1 }
  0x4b   : > { %1739 = vmatpush3.bf16.msra.mxu0 %v1950_v34 }
  0x4c   : > { %1764 = vmatprep.subr.bf16.mxu0 %v2057_v1 }
  0x4d   : > { %1759 = vmatpush3.bf16.msra.mxu1 %v1952_v35 }
  0x4e   : > { %1741 = vmatmul.mubr.bf16.vlgmr.msra.gmra.mrb[4].mxu0 %v2211_v19  ;;  %1784 = vmatprep.subr.bf16.mxu1 %v2057_v1 }
  0x4f   : > { %1765 = vmatpush3.bf16.msra.mxu0 %v1953_v36  ;;  %1780 = vmatprep.mubr.msk.bf16.mxu0 %vm2058_vm0, %v2057_v1 }
  0x50   : > { %1761 = vmatmul.mubr.bf16.vlgmr.msra.gmra.mrb[4].mxu1 %v2211_v19  ;;  %1766 = vmatprep.subr.bf16.mxu0 %v2057_v1 }
  0x51   : > { %1800 = vmatprep.mubr.msk.bf16.mxu1 %vm2058_vm0, %v2057_v1  ;;  %1785 = vmatpush3.bf16.msra.mxu1 %v1954_v37 }
  0x52   : > { %1786 = vmatprep.subr.bf16.mxu1 %v2057_v1 }
  0x53   : > { %1767 = vmatpush3.bf16.msra.mxu0 %v1955_v38 }
  0x54   : > { %1768 = vmatprep.subr.bf16.mxu0 %v2057_v1 }
  0x55   : > { %1787 = vmatpush3.bf16.msra.mxu1 %v1956_v39 }
  0x56   : > { %1788 = vmatprep.subr.bf16.mxu1 %v2057_v1 }
  0x57   : > { %1769 = vmatpush3.bf16.msra.mxu0 %v1957_v40 }
  0x58   : > { %1770 = vmatprep.subr.bf16.mxu0 %v2057_v1 }
  0x59   : > { %1789 = vmatpush3.bf16.msra.mxu1 %v1958_v41 }
  0x5a   : > { %1790 = vmatprep.subr.bf16.mxu1 %v2057_v1 }
  0x5b   : > { %1771 = vmatpush3.bf16.msra.mxu0 %v1959_v42 }
  0x5c   : > { %1772 = vmatprep.subr.bf16.mxu0 %v2057_v1 }
  0x5d   : > { %1791 = vmatpush3.bf16.msra.mxu1 %v1960_v43 }
  0x5e   : > { %1792 = vmatprep.subr.bf16.mxu1 %v2057_v1 }
  0x5f   : > { %1773 = vmatpush3.bf16.msra.mxu0 %v1961_v44 }
  0x60   : > { %1774 = vmatprep.subr.bf16.mxu0 %v2057_v1 }
  0x61   : > { %1793 = vmatpush3.bf16.msra.mxu1 %v1962_v45 }
  0x62   : > { %1794 = vmatprep.subr.bf16.mxu1 %v2057_v1 }
  0x63   : > { %1775 = vmatpush3.bf16.msra.mxu0 %v1963_v46 }
  0x64   : > { %1776 = vmatprep.subr.bf16.mxu0 %v2057_v1 }
  0x65   : > { %1795 = vmatpush3.bf16.msra.mxu1 %v1964_v47 }
  0x66   : > { %1796 = vmatprep.subr.bf16.mxu1 %v2057_v1 }
  0x67   : > { %1777 = vmatpush3.bf16.msra.mxu0 %v1965_v48 }
  0x68   : > { %1778 = vmatprep.subr.bf16.mxu0 %v2057_v1 }
  0x69   : > { %1797 = vmatpush3.bf16.msra.mxu1 %v1966_v49 }
  0x6a   : > { %1798 = vmatprep.subr.bf16.mxu1 %v2057_v1 }
  0x6b   : > { %1779 = vmatpush3.bf16.msra.mxu0 %v1967_v50 }
  0x6c   : > { %1804 = vmatprep.subr.bf16.mxu0 %v2057_v1 }
  0x6d   : > { %1799 = vmatpush3.bf16.msra.mxu1 %v1968_v51 }
  0x6e   : > { %1781 = vmatmul.mubr.bf16.vlgmr.msra.gmra.mrb[8].mxu0 %v2211_v19  ;;  %1810 = vmatprep.subr.bf16.mxu1 %v2057_v1 }
  0x6f   : > { %1806 = vmatprep.mubr.msk.bf16.mxu0 %vm2058_vm0, %v2057_v1 }
  0x70   : > { %1801 = vmatmul.mubr.bf16.vlgmr.msra.gmra.mrb[8].mxu1 %v2211_v19 }
  0x71   : > { %1812 = vmatprep.mubr.msk.bf16.mxu1 %vm2058_vm0, %v2057_v1 }
 0x101   : > { %v344_v52 = vpop.f32.mrb[0].mxu0 }
 0x102   : > { %v1702_v53 = vpop.f32.mrb[1].mxu0  ;;  %v860_v10 = vpack.c.bf16 %v344_v52, %v344_v52 }
 0x103   : > { %v347_v54 = vpop.f32.mrb[2].mxu0  ;;  %v433_v55 = vpop.f32.mrb[0].mxu1 }
 0x104   : > { %v1703_v56 = vpop.f32.mrb[3].mxu0  ;;  %v1722_v57 = vpop.f32.mrb[1].mxu1  ;;  %v861_v13 = vpack.c.bf16 %v347_v54, %v347_v54  ;;  %v862_v15 = vpack.c.bf16 %v433_v55, %v433_v55 }
 0x105   : > { %v436_v58 = vpop.f32.mrb[2].mxu1 }
 0x106   : > { %v1723_v59 = vpop.f32.mrb[3].mxu1  ;;  %v863_v16 = vpack.c.bf16 %v436_v58, %v436_v58 }
 0x121   : > { %v554_v60 = vpop.f32.mrb[4].mxu0 }
 0x122   : > { %v864_v61 = vpack.c.bf16 %v554_v60, %v554_v60  ;;  %v1742_v62 = vpop.f32.mrb[5].mxu0 }
 0x123   : > { %v557_v63 = vpop.f32.mrb[6].mxu0  ;;  %v643_v0 = vpop.f32.mrb[4].mxu1 }
 0x124   : > { %v877_v2 = vsel %vm872_vm1, %v864_v61, 0  ;;  %v865_v3 = vpack.c.bf16 %v557_v63, %v557_v63  ;;  %v1743_v4 = vpop.f32.mrb[7].mxu0  ;;  %v1762_v5 = vpop.f32.mrb[5].mxu1  ;;  %v866_v8 = vpack.c.bf16 %v643_v0, %v643_v0 }
 0x125   : > { %1805 = vmatpush3.bf16.xpose.msra.mxu0 %v877_v2  ;;  %v646_v6 = vpop.f32.mrb[6].mxu1 }
 0x126   : > { %v923_v7 = vsel %vm872_vm1, %v865_v3, 0  ;;  %v1763_v9 = vpop.f32.mrb[7].mxu1  ;;  %1816 = vmatprep.subr.bf16.mxu0 %v2057_v1  ;;  %v969_v11 = vsel %vm872_vm1, %v866_v8, 0  ;;  %v867_v12 = vpack.c.bf16 %v646_v6, %v646_v6 }
 0x127   : > { %1811 = vmatpush3.bf16.xpose.msra.mxu1 %v923_v7 }
 0x128   : > { %1822 = vmatprep.subr.bf16.mxu1 %v2057_v1  ;;  %v1015_v14 = vsel %vm872_vm1, %v867_v12, 0 }
 0x12c   : > { %1807 = vmatmul.mubr.msk.bf16.vlgmr.msra.gmra.mrb[12].mxu0 %vm872_vm1, %v860_v10 }
 0x12d   : > { %1817 = vmatpush3.bf16.xpose.msra.mxu0 %v969_v11  ;;  %1818 = vmatprep.mubr.msk.bf16.mxu0 %vm2058_vm0, %v2057_v1 }
 0x12e   : > { %1813 = vmatmul.mubr.msk.bf16.vlgmr.msra.gmra.mrb[12].mxu1 %vm872_vm1, %v861_v13  ;;  %1828 = vmatprep.subr.bf16.mxu0 %v2057_v1 }
 0x12f   : > { %1823 = vmatpush3.bf16.xpose.msra.mxu1 %v1015_v14  ;;  %1824 = vmatprep.mubr.msk.bf16.mxu1 %vm2058_vm0, %v2057_v1  ;;  %v1969_v14 = vld [vmem:[%s2496_s4] sm:$0xff]  }
 0x130   : > { %1834 = vmatprep.subr.bf16.mxu1 %v2057_v1 }
 0x134   : > { %1819 = vmatmul.mubr.msk.bf16.vlgmr.msra.gmra.mrb[16].mxu0 %vm872_vm1, %v862_v15  ;;  %v1970_v15 = vld [vmem:[%s2496_s4 + $0x8] sm:$0xff]  }
 0x135   : > { %1830 = vmatprep.mubr.msk.bf16.mxu0 %vm2058_vm0, %v2057_v1 }
 0x136   : > { %1825 = vmatmul.mubr.msk.bf16.vlgmr.msra.gmra.mrb[16].mxu1 %vm872_vm1, %v863_v16  ;;  %v1971_v16 = vld [vmem:[%s2496_s4 + $0x10] sm:$0xff]  }
 0x137   : > { %1836 = vmatprep.mubr.msk.bf16.mxu1 %vm2058_vm0, %v2057_v1 }
 0x141   : > { %v764_v17 = vpop.f32.mrb[8].mxu0 }
 0x142   : > { %v868_v18 = vpack.c.bf16 %v764_v17, %v764_v17  ;;  %v1782_v19 = vpop.f32.mrb[9].mxu0  ;;  %v1972_v17 = vld [vmem:[%s2496_s4 + $0x20] sm:$0xff]  }
 0x143   : > { %v767_v20 = vpop.f32.mrb[10].mxu0  ;;  %v853_v21 = vpop.f32.mrb[8].mxu1  ;;  %v1974_v19 = vld [vmem:[%s2496_s4 + $0x28] sm:$0xff]  }
 0x144   : > { %v1103_v22 = vsel %vm1101_vm2, %v868_v18, 0  ;;  %v869_v23 = vpack.c.bf16 %v767_v20, %v767_v20  ;;  %v1783_v24 = vpop.f32.mrb[11].mxu0  ;;  %v870_v25 = vpack.c.bf16 %v853_v21, %v853_v21  ;;  %v1802_v26 = vpop.f32.mrb[9].mxu1  ;;  %v1973_v18 = vld [vmem:[%s2496_s4 + $0x18] sm:$0xff]   ;;  %v1975_v20 = vld [vmem:[%s2496_s4 + $0x30] sm:$0xff]  }
 0x145   : > { %v856_v27 = vpop.f32.mrb[10].mxu1  ;;  %1829 = vmatpush3.bf16.msra.mxu0 %v1103_v22  ;;  %v1976_v21 = vld [vmem:[%s2496_s4 + $0x38] sm:$0xff]  }
 0x146   : > { %v1149_v28 = vsel %vm1101_vm2, %v869_v23, 0  ;;  %v1195_v29 = vsel %vm1101_vm2, %v870_v25, 0  ;;  %v871_v30 = vpack.c.bf16 %v856_v27, %v856_v27  ;;  %v1803_v31 = vpop.f32.mrb[11].mxu1  ;;  %1840 = vmatprep.subr.bf16.mxu0 %v2057_v1 }
 0x147   : > { %1835 = vmatpush3.bf16.msra.mxu1 %v1149_v28 }
 0x148   : > { %v1241_v32 = vsel %vm1101_vm2, %v871_v30, 0  ;;  %1846 = vmatprep.subr.bf16.mxu1 %v2057_v1 }
 0x1ff   : > { %v913_v33 = vpop.f32.mrb[12].mxu0 }
 0x200   : > { %v1808_v34 = vpop.f32.mrb[13].mxu0  ;;  %v1058_v35 = vsel %vm1057_vm3, %v913_v33, -inf }
 0x201   : > { %v959_v36 = vpop.f32.mrb[12].mxu1  ;;  %1059 = vmax.xlane.f32.xlu0 %v1058_v35  ;;  %v916_v37 = vpop.f32.mrb[14].mxu0 }
 0x202   : > { %v1809_v38 = vpop.f32.mrb[15].mxu0  ;;  %v1814_v39 = vpop.f32.mrb[13].mxu1  ;;  %v1061_v42 = vsel %vm1057_vm3, %v959_v36, -inf }
 0x203   : > { %v962_v40 = vpop.f32.mrb[14].mxu1 }
 0x204   : > { %v1815_v41 = vpop.f32.mrb[15].mxu1 }
 0x205   : > { %1062 = vmax.xlane.f32.xlu0 %v1061_v42 }
 0x207   : > { %v1005_v43 = vpop.f32.mrb[16].mxu0 }
 0x208   : > { %v1820_v44 = vpop.f32.mrb[17].mxu0  ;;  %v1064_v45 = vsel %vm1057_vm3, %v1005_v43, -inf }
 0x209   : > { %v1051_v46 = vpop.f32.mrb[16].mxu1  ;;  %1065 = vmax.xlane.f32.xlu1 %v1064_v45  ;;  %v1008_v47 = vpop.f32.mrb[18].mxu0 }
 0x20a   : > { %v1821_v48 = vpop.f32.mrb[19].mxu0  ;;  %v1826_v49 = vpop.f32.mrb[17].mxu1  ;;  %v1067_v52 = vsel %vm1057_vm3, %v1051_v46, -inf }
 0x20b   : > { %v1054_v50 = vpop.f32.mrb[18].mxu1 }
 0x20c   : > { %v1827_v51 = vpop.f32.mrb[19].mxu1 }
 0x20d   : > { %1068 = vmax.xlane.f32.xlu1 %v1067_v52 }
 0x28e   : > { %v1060_v53 = vpop.xlane.xlu0 %1059 }
 0x28f   : > { %v1070_v54 = vsub.f32 %v913_v33, %v1060_v53 }
 0x291   : > { %v1074_v55 = vmul.f32 1.442695, %v1070_v54 }
 0x292   : > { %v1063_v56 = vpop.xlane.xlu0 %1062 }
 0x293   : > { %1977 = vpow2.f32 %v1074_v55  ;;  %v1071_v57 = vsub.f32 %v959_v36, %v1063_v56 }
 0x295   : > { %v1076_v58 = vmul.f32 1.442695, %v1071_v57 }
 0x296   : > { %v1066_v59 = vpop.xlane.xlu1 %1065 }
 0x297   : > { %1979 = vpow2.f32 %v1076_v58  ;;  %v1072_v60 = vsub.f32 %v1005_v43, %v1066_v59 }
 0x299   : > { %v1078_v61 = vmul.f32 1.442695, %v1072_v60 }
 0x29a   : > { %v1069_v62 = vpop.xlane.xlu1 %1068 }
 0x29b   : > { %1981 = vpow2.f32 %v1078_v61  ;;  %v1073_v63 = vsub.f32 %v1051_v46, %v1069_v62 }
 0x29d   : > { %v1978_v0 = vpop.eup %1977  ;;  %v1080_v2 = vmul.f32 1.442695, %v1073_v63 }
 0x29e   : > { %v1082_v3 = vsel %vm1057_vm3, %v1978_v0, 0.0  ;;  %v1094_v4 = vpack.c.bf16 %v1978_v0, %v1978_v0 }
 0x29f   : > { %1983 = vpow2.f32 %v1080_v2  ;;  %1083 = vadd.xlane.f32.xlu0 %v1082_v3 }
 0x2a0   : > { %1831 = vmatmul.mubr.msk.bf16.vlgmr.msra.gmra.mrb[20].mxu0 %vm1057_vm3, %v1094_v4 }
 0x2a1   : > { %v1980_v5 = vpop.eup %1979  ;;  %1841 = vmatpush3.bf16.msra.mxu0 %v1195_v29  ;;  %1842 = vmatprep.mubr.msk.bf16.mxu0 %vm2058_vm0, %v2057_v1 }
 0x2a2   : > { %v1085_v6 = vsel %vm1057_vm3, %v1980_v5, 0.0  ;;  %v1095_v7 = vpack.c.bf16 %v1980_v5, %v1980_v5  ;;  %1864 = vmatprep.subr.bf16.mxu0 %v2057_v1 }
 0x2a3   : > { %1086 = vadd.xlane.f32.xlu1 %v1085_v6 }
 0x2a4   : > { %1837 = vmatmul.mubr.msk.bf16.vlgmr.msra.gmra.mrb[20].mxu1 %vm1057_vm3, %v1095_v7 }
 0x2a5   : > { %v1982_v8 = vpop.eup %1981  ;;  %1847 = vmatpush3.bf16.msra.mxu1 %v1241_v32  ;;  %1848 = vmatprep.mubr.msk.bf16.mxu1 %vm2058_vm0, %v2057_v1 }
 0x2a6   : > { %v1088_v9 = vsel %vm1057_vm3, %v1982_v8, 0.0  ;;  %v1096_v10 = vpack.c.bf16 %v1982_v8, %v1982_v8  ;;  %1852 = vmatprep.subr.bf16.mxu1 %v2057_v1 }
 0x2a7   : > { %1089 = vadd.xlane.f32.xlu0 %v1088_v9 }
 0x2a8   : > { %1843 = vmatmul.mubr.msk.bf16.vlgmr.msra.gmra.mrb[24].mxu0 %vm1057_vm3, %v1096_v10 }
 0x2a9   : > { %v1984_v11 = vpop.eup %1983  ;;  %1872 = vmatprep.mubr.msk.bf16.mxu0 %vm2058_vm0, %v2057_v1  ;;  %1865 = vmatpush3.bf16.msra.mxu0 %v1972_v17 }
 0x2aa   : > { %v1091_v12 = vsel %vm1057_vm3, %v1984_v11, 0.0  ;;  %v1097_v13 = vpack.c.bf16 %v1984_v11, %v1984_v11  ;;  %1866 = vmatprep.subr.bf16.mxu0 %v2057_v1 }
 0x2ab   : > { %1092 = vadd.xlane.f32.xlu1 %v1091_v12 }
 0x2ac   : > { %1849 = vmatmul.mubr.msk.bf16.vlgmr.msra.gmra.mrb[24].mxu1 %vm1057_vm3, %v1097_v13 }
 0x2ad   : > { %1860 = vmatprep.mubr.msk.bf16.mxu1 %vm2058_vm0, %v2057_v1  ;;  %1853 = vmatpush3.bf16.msra.mxu1 %v1969_v14 }
 0x2ae   : > { %1854 = vmatprep.subr.bf16.mxu1 %v2057_v1  ;;  %1867 = vmatpush3.bf16.msra.mxu0 %v1974_v19 }
 0x2af   : > { %1868 = vmatprep.subr.bf16.mxu0 %v2057_v1 }
 0x2b1   : > { %1855 = vmatpush3.bf16.msra.mxu1 %v1970_v15 }
 0x2b2   : > { %1856 = vmatprep.subr.bf16.mxu1 %v2057_v1  ;;  %1869 = vmatpush3.bf16.msra.mxu0 %v1975_v20 }
 0x2b3   : > { %1870 = vmatprep.subr.bf16.mxu0 %v2057_v1 }
 0x2b5   : > { %1857 = vmatpush3.bf16.msra.mxu1 %v1971_v16 }
 0x2b6   : > { %1858 = vmatprep.subr.bf16.mxu1 %v2057_v1  ;;  %1871 = vmatpush3.bf16.msra.mxu0 %v1976_v21 }
 0x2b9   : > { %1859 = vmatpush3.bf16.msra.mxu1 %v1973_v18 }
 0x32c   : > { %v1084_v22 = vpop.xlane.xlu0 %1083 }
 0x32d   : > { %1985 = vrcp.f32 %v1084_v22 }
 0x330   : > { %v1087_v23 = vpop.xlane.xlu1 %1086 }
 0x331   : > { %1987 = vrcp.f32 %v1087_v23 }
 0x334   : > { %v1090_v24 = vpop.xlane.xlu0 %1089 }
 0x335   : > { %1989 = vrcp.f32 %v1090_v24 }
 0x337   : > { %v1986_v29 = vpop.eup %1985 }
 0x338   : > { %v1093_v25 = vpop.xlane.xlu1 %1092 }
 0x339   : > { %1991 = vrcp.f32 %v1093_v25 }
 0x33b   : > { %v1988_v31 = vpop.eup %1987 }
 0x33f   : > { %v1990_v41 = vpop.eup %1989 }
 0x343   : > { %v1992_v43 = vpop.eup %1991 }
 0x373   : > { %v1139_v26 = vpop.f32.mrb[20].mxu0 }
 0x374   : > { %v1832_v27 = vpop.f32.mrb[21].mxu0  ;;  %v1287_v32 = vmul.f32 %v1986_v29, %v1139_v26 }
 0x375   : > { %v1142_v28 = vpop.f32.mrb[22].mxu0 }
 0x376   : > { %v1833_v30 = vpop.f32.mrb[23].mxu0 }
 0x377   : > { %v1185_v1 = vpop.f32.mrb[20].mxu1 }
 0x378   : > { %v1288_v33 = vmul.f32 %v1988_v31, %v1185_v1  ;;  %v1838_v34 = vpop.f32.mrb[21].mxu1 }
 0x379   : > { %v1188_v35 = vpop.f32.mrb[22].mxu1 }
 0x37a   : > { %v1291_v36 = vpack.c.bf16 %v1288_v33, %v1287_v32  ;;  %v1839_v37 = vpop.f32.mrb[23].mxu1 }
 0x37b   : > { %v1231_v38 = vpop.f32.mrb[24].mxu0 }
 0x37c   : > { %v1844_v39 = vpop.f32.mrb[25].mxu0  ;;  %1861 = vmatmul.mubr.msk.bf16.vlgmr.msra.gmra.mrb[28].mxu1 %vm872_vm1, %v1291_v36  ;;  %v1289_v45 = vmul.f32 %v1990_v41, %v1231_v38 }
 0x37d   : > { %v1234_v40 = vpop.f32.mrb[26].mxu0 }
 0x37e   : > { %v1845_v42 = vpop.f32.mrb[27].mxu0 }
 0x37f   : > { %v1277_v44 = vpop.f32.mrb[24].mxu1 }
 0x380   : > { %v1290_v46 = vmul.f32 %v1992_v43, %v1277_v44  ;;  %v1850_v47 = vpop.f32.mrb[25].mxu1 }
 0x381   : > { %v1280_v48 = vpop.f32.mrb[26].mxu1 }
 0x382   : > { %v1292_v49 = vpack.c.bf16 %v1290_v46, %v1289_v45  ;;  %v1851_v50 = vpop.f32.mrb[27].mxu1 }
 0x384   : > { %1873 = vmatmul.mubr.msk.bf16.vlgmr.msra.gmra.mrb[28].mxu0 %vm872_vm1, %v1292_v49 }
 0x44f   : > { %v1370_v51 = vpop.f32.mrb[28].mxu1 }
 0x450   : > { %v1862_v52 = vpop.f32.mrb[29].mxu1 }
 0x451   : > { %v1373_v53 = vpop.f32.mrb[30].mxu1 }
 0x452   : > { %v1863_v54 = vpop.f32.mrb[31].mxu1 }
 0x457   : > { %v1438_v55 = vpop.f32.mrb[28].mxu0 }
 0x458   : > { %v1445_v56 = vadd.f32 %v1438_v55, %v1370_v51  ;;  %v1874_v57 = vpop.f32.mrb[29].mxu0 }
 0x459   : > { %v1441_v58 = vpop.f32.mrb[30].mxu0 }
 0x45a   : > { %1447 = vst [vmem:[%s218_s12] sm:$0xff] %v1445_v56  ;;  %v1446_v59 = vadd.f32 %v1441_v58, %v1373_v53  ;;  %v1875_v60 = vpop.f32.mrb[31].mxu0 }
 0x45c   : > { %1448 = vst [vmem:[%s218_s12 + $0x8] sm:$0xff] %v1446_v59 }
 0x45d   : > { %2006 = shalt.err (!%p2003_p3)
}
 0x45e   : > { %s2007_s6 = scalar_lea.hbm %s2449_s23, 256  ;;  %s2011_s9 = scalar_lea.hbm %s2497_s5, 512 }
 0x45f   : > { %p2008_p4 = scmp.ne.s32.totalorder %s2449_s23, %s2007_s6  ;;  %p2012_p9 = scmp.lt.u32.totalorder %s2449_s23, %s2497_s5 }
 0x460   : > { %p2013_p10 = scmp.lt.u32.totalorder %s2011_s9, %s2007_s6  ;;  %p2015_p12 = scmp.lt.u32.totalorder %s2007_s6, %s2449_s23 }
 0x461   : > { %p2009_p7 = pnand %p2008_p4, %p2130_p5 }
 0x462   : > { %p2014_p11 = por %p2013_p10, %p2012_p9 }
 0x463   : > { %p2010_p8 = pneg %p2009_p7 }
 0x464   : > { %p2016_p13 = por %p2015_p12, %p2014_p11 }
 0x466   : > { %p2017_p0 = pnand %p2016_p13, %p2010_p8 }
 0x468   : > { %2020 = shalt.err (!%p2017_p0)
}
 0x469   : > { %s2060_s12 = smov 128   ;;  %s2061_s14 = smov 8  }
 0x46a   : > { %1878 = dma.vmem_to_hbm [thread:$0]  (%p2130_p5), %s2444_s13, 256, %s2449_s23, %s2451_s25, %s2060_s12, %s2060_s12, %s2061_s14  }
 0x46b PF: > { %p1884_p1 = scmp.ge.s32.totalorder %s2055_s21, 2  ;;  %s1478_s15 = sand.u32 1, %s2043_s18  }
 0x46c   : > { %s1479_s16 = scalar_lea.sflag [#allocation3], %s1478_s15 }
 0x46d   : > { %p1881_p2 = pnand %p1884_p1, %p2134_p6 }
 0x46f   : > { %2038 = dma.done.wait (!%p1881_p2), %s1479_s16, 256  }
 0x470   : > { %2040 = vsyncadd (!%p1881_p2), %s1479_s16, 4294967040  ;;  %p15_p3 = scmp.ge.s32.totalorder %s2117_s24, 4   ;;  %s2500_s18 = smov %s2047_s19 }
 0x471   : > { %s2501_s19 = smov %s2051_s20  ;;  %s2502_s20 = smov %s2128_s27 }
 0x472   : > { %s2503_s21 = smov %s2117_s24  ;;  %17 = sbr.rel (!%p15_p3) target bundleno = 3 (0x3), region = 75 }
 0x479   :  { %1484 = vsyncpa [#allocation3], 1 }
 0x47a   :  { %1486 = vsyncpa [#allocation3 + $0x1], 1 }

</bundles_post_ra>
